<compile_context>
chip_gen: v7x
topology: tpu7x:2x2x1
jax: 0.10.0
libtpu: 0.0.40
codegen_flags: <defaults>
</compile_context>

<pallas_src>
import functools

import jax
import jax.numpy as jnp
from jax import lax
from jax.experimental import pallas as pl
from jax.experimental.pallas import tpu as pltpu


def _infonce_kernel(q_ref, pt_ref, out_ref, m_sc, l_sc, diag_sc, qn_sc, *,
                    inv_temp):
    """One (qi, kv) grid step of the tiled InfoNCE loss.

    q_ref  : (TQ, D)   query-row tile (same block for all kv steps)
    pt_ref : (D, TK)   passage tile, already transposed (D on sublanes)
    out_ref: (TQ, 1)   per-row loss, written only at the last kv step
    m_sc, l_sc, diag_sc, qn_sc : (TQ, 1) f32 VMEM scratch
    """
    eps = 1e-8
    qi = pl.program_id(0)
    kv = pl.program_id(1)

    q = q_ref[...]          # (TQ, D), native dtype
    pt = pt_ref[...]        # (D, TK), native dtype

    @pl.when(kv == 0)
    def _():
        m_sc[...] = jnp.full_like(m_sc, -jnp.inf)
        l_sc[...] = jnp.zeros_like(l_sc)
        diag_sc[...] = jnp.zeros_like(diag_sc)
        qf = q.astype(jnp.float32)
        qn_sc[...] = jnp.sqrt(jnp.sum(qf * qf, axis=-1, keepdims=True))

    # Pairwise dot products on the MXU: (TQ, D) @ (D, TK) -> (TQ, TK) f32.
    qp = jnp.dot(q, pt, preferred_element_type=jnp.float32)

    # Passage-column norms for this tile (f32 accumulation). VPU/XLU work,
    # hidden under the MXU matmul for realistic D.
    pf = pt.astype(jnp.float32)
    p_norm = jnp.sqrt(jnp.sum(pf * pf, axis=0, keepdims=True))      # (1, TK)

    # Cosine similarity with torch's product clamp, temperature folded into
    # the single per-element scale.
    denom = jnp.maximum(qn_sc[...] * p_norm, eps)                   # (TQ, TK)
    scores = qp * (inv_temp / denom)                                # (TQ, TK)

    # Online logsumexp update.
    m_prev = m_sc[...]
    m_new = jnp.maximum(m_prev, jnp.max(scores, axis=-1, keepdims=True))
    alpha = jnp.exp(m_prev - m_new)                                 # (TQ, 1)
    p_exp = jnp.exp(scores - m_new)                                 # EUP
    l_sc[...] = alpha * l_sc[...] + jnp.sum(p_exp, axis=-1, keepdims=True)
    m_sc[...] = m_new

    # Diagonal entries scores[i, i] (labels = arange(Bq)) only live in the kv
    # tiles whose global column range overlaps this qi tile's row range.
    tq, tk = scores.shape
    row_lo = qi * tq
    col_lo = kv * tk

    @pl.when(jnp.logical_and(row_lo < col_lo + tk, col_lo < row_lo + tq))
    def _():
        row_g = row_lo + lax.broadcasted_iota(jnp.int32, (tq, tk), 0)
        col_g = col_lo + lax.broadcasted_iota(jnp.int32, (tq, tk), 1)
        diag_sc[...] += jnp.sum(
            jnp.where(row_g == col_g, scores, 0.0), axis=-1, keepdims=True)

    # Finalize: per-row loss = logsumexp - diagonal score.
    @pl.when(kv == pl.num_programs(1) - 1)
    def _():
        out_ref[...] = m_sc[...] + jnp.log(l_sc[...]) - diag_sc[...]


def _pick_tile(n, cap, align):
    """Largest divisor of n that is <= cap and a multiple of `align`; n if small."""
    if n <= cap:
        return n
    t = (cap // align) * align
    while t >= align:
        if n % t == 0:
            return t
        t -= align
    return n  # no legal divisor: fall back to the full extent


def _choose_tiles(bq, bp, d, itemsize):
    # Keep each input tile <= ~6 MiB so double-buffered inputs plus the f32
    # (TQ, TK) temporaries stay under v7x's 64 MiB physical VMEM (and close
    # to the default scoped limit); cap at 512/1024 to amortize per-grid-step
    # overhead on v5e/v6e while keeping the score tile <= 512x1024 f32 (2 MiB).
    budget = 6 * 1024 * 1024
    row_cap = max(8, budget // max(1, d * itemsize))
    tq = _pick_tile(bq, min(512, row_cap), 8)
    tk = _pick_tile(bp, min(1024, row_cap), 128)
    return tq, tk


@functools.partial(jax.jit, static_argnums=(2,),
                   static_argnames=("tile_q", "tile_k"))
def asymm_inbatch_negative_infonce_loss(q_emb, p_emb, temperature=1.0, *,
                                        tile_q=None, tile_k=None):
    """Pallas TPU implementation of AsymmInBatchNegativeInfoNCELoss.forward."""
    bq, d = q_emb.shape
    bp, d2 = p_emb.shape
    assert d == d2, "q_emb and p_emb must share the hidden dim"
    # TODO(synk): like the PyTorch module, this assumes Bq <= Bp (labels
    # arange(Bq) must index valid p columns); Bq > Bp is undefined behaviour.

    itemsize = q_emb.dtype.itemsize
    tq, tk = _choose_tiles(bq, bp, d, itemsize)
    if tile_q is not None:
        tq = tile_q
    if tile_k is not None:
        tk = tile_k
    assert bq % tq == 0 and bp % tk == 0, "tiles must divide the batch dims"

    # Present p as (D, Bp) so the kernel contraction is a transpose-free
    # (TQ, D) @ (D, TK) MXU matmul (one HBM transpose instead of per-tile
    # XLU transposes).
    p_t = p_emb.T

    grid = (bq // tq, bp // tk)

    # VMEM budget estimate (double-buffered inputs + f32 temporaries).
    est = 2 * (tq * d + d * tk) * itemsize
    est += 6 * tq * tk * 4
    est += 4 * tq * 128 * 4
    vmem_limit = min(max((est * 3) // 2, 32 * 1024 * 1024), 64 * 1024 * 1024)

    kernel = functools.partial(_infonce_kernel,
                               inv_temp=float(1.0 / temperature))

    row_losses = pl.pallas_call(
        kernel,
        out_shape=jax.ShapeDtypeStruct((bq, 1), jnp.float32),
        grid_spec=pltpu.PrefetchScalarGridSpec(
            num_scalar_prefetch=0,
            grid=grid,
            in_specs=[
                pl.BlockSpec((tq, d), lambda i, k: (i, 0)),
                pl.BlockSpec((d, tk), lambda i, k: (0, k)),
            ],
            out_specs=pl.BlockSpec((tq, 1), lambda i, k: (i, 0)),
            scratch_shapes=[
                pltpu.VMEM((tq, 1), jnp.float32),  # running max m
                pltpu.VMEM((tq, 1), jnp.float32),  # running sum l
                pltpu.VMEM((tq, 1), jnp.float32),  # diagonal score
                pltpu.VMEM((tq, 1), jnp.float32),  # cached q-row norms
            ],
        ),
        compiler_params=pltpu.CompilerParams(
            dimension_semantics=("parallel", "arbitrary"),
            vmem_limit_bytes=int(vmem_limit),
        ),
        cost_estimate=pl.CostEstimate(
            flops=int(2 * bq * bp * d),
            transcendentals=int(bq * bp),
            bytes_accessed=int(bq * d * itemsize            # q fetched once/tile
                               + grid[0] * bp * d * itemsize  # p re-read per qi tile
                               + bq * 4),
        ),
    )(q_emb, p_t)

    # Tiny final reduction (mean over Bq) done outside the kernel so the
    # "parallel" qi axis stays safe under megacore sharding; fused by jit.
    return jnp.mean(row_losses)


def _reference_loss(q_emb, p_emb, temperature=1.0):
    """Pure-JAX reference for correctness checking."""
    eps = 1e-8
    q = q_emb.astype(jnp.float32)
    p = p_emb.astype(jnp.float32)
    qp = q @ p.T
    denom = jnp.maximum(
        jnp.linalg.norm(q, axis=-1, keepdims=True)
        * jnp.linalg.norm(p, axis=-1, keepdims=True).T,
        eps,
    )
    scores = (qp / denom) / temperature
    labels = jnp.arange(scores.shape[0])
    logp = jax.nn.log_softmax(scores, axis=-1)
    return -jnp.mean(logp[jnp.arange(scores.shape[0]), labels])


if __name__ == "__main__":
    key = jax.random.PRNGKey(0)
    kq, kp = jax.random.split(key)

    # Test 1: small symmetric batch (matches the original module usage).
    B, D = 8, 32
    q_emb = jax.random.normal(kq, (B, D), dtype=jnp.float32)
    p_emb = jax.random.normal(kp, (B, D), dtype=jnp.float32)
    loss = jax.block_until_ready(
        asymm_inbatch_negative_infonce_loss(q_emb, p_emb, 1.0))
    ref = jax.block_until_ready(_reference_loss(q_emb, p_emb, 1.0))
    assert jnp.allclose(loss, ref, atol=1e-4, rtol=1e-4), (loss, ref)

    # Test 2: asymmetric batch with forced small tiles to exercise the
    # multi-tile online-logsumexp path and the diagonal overlap gating.
    Bq, Bp, D2 = 16, 256, 32
    q2 = jax.random.normal(kq, (Bq, D2), dtype=jnp.float32)
    p2 = jax.random.normal(kp, (Bp, D2), dtype=jnp.float32)
    loss2 = jax.block_until_ready(
        asymm_inbatch_negative_infonce_loss(q2, p2, 0.25, tile_q=8, tile_k=128))
    ref2 = jax.block_until_ready(_reference_loss(q2, p2, 0.25))
    assert jnp.allclose(loss2, ref2, atol=1e-3, rtol=1e-3), (loss2, ref2)

    print("KERNEL_OK")
</pallas_src>

<mosaic_0001>
module attributes {stable_mosaic.version = 11 : i64} {
  func.func @_infonce_kernel(%arg0: i32, %arg1: i32, %arg2: memref<8x32xf32, #tpu.memory_space<vmem>>, %arg3: memref<32x8xf32, #tpu.memory_space<vmem>>, %arg4: memref<8x1xf32, #tpu.memory_space<vmem>>, %arg5: memref<8x1xf32, #tpu.memory_space<vmem>>, %arg6: memref<8x1xf32, #tpu.memory_space<vmem>>, %arg7: memref<8x1xf32, #tpu.memory_space<vmem>>, %arg8: memref<8x1xf32, #tpu.memory_space<vmem>>) attributes {dimension_semantics = [#tpu.dimension_semantics<parallel>, #tpu.dimension_semantics<arbitrary>], iteration_bounds = array<i64: 1, 1>, scalar_prefetch = 0 : i64, scratch_operands = 4 : i64, tpu.core_type = #tpu.core_type<tc>, window_params = [{transform_indices = @transform_0, window_bounds = array<i64: 8, 32>}, {transform_indices = @transform_1, window_bounds = array<i64: 32, 8>}, {transform_indices = @transform_2, window_bounds = array<i64: 8, 1>}]} {
    %c0 = arith.constant 0 : index
    %c0_0 = arith.constant 0 : index
    %0 = vector.load %arg2[%c0, %c0_0] : memref<8x32xf32, #tpu.memory_space<vmem>>, vector<8x32xf32>
    %c0_1 = arith.constant 0 : index
    %c0_2 = arith.constant 0 : index
    %1 = vector.load %arg3[%c0_1, %c0_2] : memref<32x8xf32, #tpu.memory_space<vmem>>, vector<32x8xf32>
    %c0_i32 = arith.constant 0 : i32
    %2 = arith.cmpi eq, %arg1, %c0_i32 : i32
    %3 = arith.extui %2 : i1 to i32
    %c0_i32_3 = arith.constant 0 : i32
    %4 = arith.cmpi ne, %3, %c0_i32_3 : i32
    scf.if %4 {
      %cst_25 = arith.constant 0xFF800000 : f32
      %47 = vector.broadcast %cst_25 : f32 to vector<8x1xf32>
      %c0_26 = arith.constant 0 : index
      %c0_27 = arith.constant 0 : index
      %48 = vector.load %arg5[%c0_26, %c0_27] : memref<8x1xf32, #tpu.memory_space<vmem>>, vector<8x1xf32>
      tpu.vector_store %arg5[%c0_26, %c0_27], %47 {strides = array<i32>} : memref<8x1xf32, #tpu.memory_space<vmem>>, vector<8x1xf32>,
      %cst_28 = arith.constant 0.000000e+00 : f32
      %49 = vector.broadcast %cst_28 : f32 to vector<8x1xf32>
      %c0_29 = arith.constant 0 : index
      %c0_30 = arith.constant 0 : index
      %50 = vector.load %arg6[%c0_29, %c0_30] : memref<8x1xf32, #tpu.memory_space<vmem>>, vector<8x1xf32>
      tpu.vector_store %arg6[%c0_29, %c0_30], %49 {strides = array<i32>} : memref<8x1xf32, #tpu.memory_space<vmem>>, vector<8x1xf32>,
      %cst_31 = arith.constant 0.000000e+00 : f32
      %51 = vector.broadcast %cst_31 : f32 to vector<8x1xf32>
      %c0_32 = arith.constant 0 : index
      %c0_33 = arith.constant 0 : index
      %52 = vector.load %arg7[%c0_32, %c0_33] : memref<8x1xf32, #tpu.memory_space<vmem>>, vector<8x1xf32>
      tpu.vector_store %arg7[%c0_32, %c0_33], %51 {strides = array<i32>} : memref<8x1xf32, #tpu.memory_space<vmem>>, vector<8x1xf32>,
      %53 = arith.mulf %0, %0 : vector<8x32xf32>
      %cst_34 = arith.constant dense<0.000000e+00> : vector<8xf32>
      %54 = vector.multi_reduction <add>, %53, %cst_34 [1] : vector<8x32xf32> to vector<8xf32>
      %55 = vector.shape_cast %54 : vector<8xf32> to vector<8x1xf32>
      %56 = math.sqrt %55 : vector<8x1xf32>
      %c0_35 = arith.constant 0 : index
      %c0_36 = arith.constant 0 : index
      %57 = vector.load %arg8[%c0_35, %c0_36] : memref<8x1xf32, #tpu.memory_space<vmem>>, vector<8x1xf32>
      tpu.vector_store %arg8[%c0_35, %c0_36], %56 {strides = array<i32>} : memref<8x1xf32, #tpu.memory_space<vmem>>, vector<8x1xf32>,
    } else {
    }
    %cst = arith.constant dense<0.000000e+00> : vector<8x8xf32>
    %5 = tpu.matmul %0, %1, %cst {dimension_numbers = #tpu.dot_dimension_numbers<[1], [0], [0], [1], [0, 0, 1, 1], [], []>} : vector<8x32xf32>, vector<32x8xf32>, vector<8x8xf32> -> vector<8x8xf32>
    %6 = arith.mulf %1, %1 : vector<32x8xf32>
    %cst_4 = arith.constant dense<0.000000e+00> : vector<8xf32>
    %7 = vector.multi_reduction <add>, %6, %cst_4 [0] : vector<32x8xf32> to vector<8xf32>
    %8 = vector.shape_cast %7 : vector<8xf32> to vector<1x8xf32>
    %9 = math.sqrt %8 : vector<1x8xf32>
    %c0_5 = arith.constant 0 : index
    %c0_6 = arith.constant 0 : index
    %10 = vector.load %arg8[%c0_5, %c0_6] : memref<8x1xf32, #tpu.memory_space<vmem>>, vector<8x1xf32>
    %11 = vector.broadcast %10 : vector<8x1xf32> to vector<8x8xf32>
    %12 = vector.broadcast %9 : vector<1x8xf32> to vector<8x8xf32>
    %13 = arith.mulf %11, %12 : vector<8x8xf32>
    %cst_7 = arith.constant 9.99999993E-9 : f32
    %14 = vector.broadcast %cst_7 : f32 to vector<8x8xf32>
    %15 = arith.maximumf %13, %14 : vector<8x8xf32>
    %cst_8 = arith.constant 1.000000e+00 : f32
    %16 = vector.broadcast %cst_8 : f32 to vector<8x8xf32>
    %17 = arith.divf %16, %15 : vector<8x8xf32>
    %18 = arith.mulf %5, %17 : vector<8x8xf32>
    %c0_9 = arith.constant 0 : index
    %c0_10 = arith.constant 0 : index
    %19 = vector.load %arg5[%c0_9, %c0_10] : memref<8x1xf32, #tpu.memory_space<vmem>>, vector<8x1xf32>
    %cst_11 = arith.constant dense<0xFF800000> : vector<8xf32>
    %20 = vector.multi_reduction <maximumf>, %18, %cst_11 [1] : vector<8x8xf32> to vector<8xf32>
    %21 = vector.shape_cast %20 : vector<8xf32> to vector<8x1xf32>
    %22 = arith.maximumf %19, %21 : vector<8x1xf32>
    %23 = arith.subf %19, %22 : vector<8x1xf32>
    %24 = math.exp %23 : vector<8x1xf32>
    %25 = vector.broadcast %22 : vector<8x1xf32> to vector<8x8xf32>
    %26 = arith.subf %18, %25 : vector<8x8xf32>
    %27 = math.exp %26 : vector<8x8xf32>
    %c0_12 = arith.constant 0 : index
    %c0_13 = arith.constant 0 : index
    %28 = vector.load %arg6[%c0_12, %c0_13] : memref<8x1xf32, #tpu.memory_space<vmem>>, vector<8x1xf32>
    %29 = arith.mulf %24, %28 : vector<8x1xf32>
    %cst_14 = arith.constant dense<0.000000e+00> : vector<8xf32>
    %30 = vector.multi_reduction <add>, %27, %cst_14 [1] : vector<8x8xf32> to vector<8xf32>
    %31 = vector.shape_cast %30 : vector<8xf32> to vector<8x1xf32>
    %32 = arith.addf %29, %31 : vector<8x1xf32>
    %c0_15 = arith.constant 0 : index
    %c0_16 = arith.constant 0 : index
    %33 = vector.load %arg6[%c0_15, %c0_16] : memref<8x1xf32, #tpu.memory_space<vmem>>, vector<8x1xf32>
    tpu.vector_store %arg6[%c0_15, %c0_16], %32 {strides = array<i32>} : memref<8x1xf32, #tpu.memory_space<vmem>>, vector<8x1xf32>,
    %c0_17 = arith.constant 0 : index
    %c0_18 = arith.constant 0 : index
    %34 = vector.load %arg5[%c0_17, %c0_18] : memref<8x1xf32, #tpu.memory_space<vmem>>, vector<8x1xf32>
    tpu.vector_store %arg5[%c0_17, %c0_18], %22 {strides = array<i32>} : memref<8x1xf32, #tpu.memory_space<vmem>>, vector<8x1xf32>,
    %c8_i32 = arith.constant 8 : i32
    %35 = arith.muli %arg0, %c8_i32 : i32
    %c8_i32_19 = arith.constant 8 : i32
    %36 = arith.muli %arg1, %c8_i32_19 : i32
    %c8_i32_20 = arith.constant 8 : i32
    %37 = arith.addi %36, %c8_i32_20 : i32
    %38 = arith.cmpi slt, %35, %37 : i32
    %c8_i32_21 = arith.constant 8 : i32
    %39 = arith.addi %35, %c8_i32_21 : i32
    %40 = arith.cmpi slt, %36, %39 : i32
    %41 = arith.andi %38, %40 : i1
    %42 = arith.extui %41 : i1 to i32
    %c0_i32_22 = arith.constant 0 : i32
    %43 = arith.cmpi ne, %42, %c0_i32_22 : i32
    scf.if %43 {
      %47 = tpu.iota {dimensions = array<i32: 0>} : vector<8x8xi32>
      %48 = vector.broadcast %35 : i32 to vector<8x8xi32>
      %49 = arith.addi %48, %47 : vector<8x8xi32>
      %50 = tpu.iota {dimensions = array<i32: 1>} : vector<8x8xi32>
      %51 = vector.broadcast %36 : i32 to vector<8x8xi32>
      %52 = arith.addi %51, %50 : vector<8x8xi32>
      %c0_25 = arith.constant 0 : index
      %c0_26 = arith.constant 0 : index
      %53 = vector.load %arg7[%c0_25, %c0_26] : memref<8x1xf32, #tpu.memory_space<vmem>>, vector<8x1xf32>
      %54 = arith.cmpi eq, %49, %52 : vector<8x8xi32>
      %cst_27 = arith.constant 0.000000e+00 : f32
      %55 = vector.broadcast %cst_27 : f32 to vector<8x8xf32>
      %56 = arith.select %54, %18, %55 : vector<8x8xi1>, vector<8x8xf32>
      %cst_28 = arith.constant dense<0.000000e+00> : vector<8xf32>
      %57 = vector.multi_reduction <add>, %56, %cst_28 [1] : vector<8x8xf32> to vector<8xf32>
      %58 = vector.shape_cast %57 : vector<8xf32> to vector<8x1xf32>
      %59 = arith.addf %53, %58 : vector<8x1xf32>
      %c0_29 = arith.constant 0 : index
      %c0_30 = arith.constant 0 : index
      %60 = vector.load %arg7[%c0_29, %c0_30] : memref<8x1xf32, #tpu.memory_space<vmem>>, vector<8x1xf32>
      tpu.vector_store %arg7[%c0_29, %c0_30], %59 {strides = array<i32>} : memref<8x1xf32, #tpu.memory_space<vmem>>, vector<8x1xf32>,
    } else {
    }
    %c0_i32_23 = arith.constant 0 : i32
    %44 = arith.cmpi eq, %arg1, %c0_i32_23 : i32
    %45 = arith.extui %44 : i1 to i32
    %c0_i32_24 = arith.constant 0 : i32
    %46 = arith.cmpi ne, %45, %c0_i32_24 : i32
    scf.if %46 {
      %c0_25 = arith.constant 0 : index
      %c0_26 = arith.constant 0 : index
      %47 = vector.load %arg5[%c0_25, %c0_26] : memref<8x1xf32, #tpu.memory_space<vmem>>, vector<8x1xf32>
      %c0_27 = arith.constant 0 : index
      %c0_28 = arith.constant 0 : index
      %48 = vector.load %arg6[%c0_27, %c0_28] : memref<8x1xf32, #tpu.memory_space<vmem>>, vector<8x1xf32>
      %49 = math.log %48 : vector<8x1xf32>
      %50 = arith.addf %47, %49 : vector<8x1xf32>
      %c0_29 = arith.constant 0 : index
      %c0_30 = arith.constant 0 : index
      %51 = vector.load %arg7[%c0_29, %c0_30] : memref<8x1xf32, #tpu.memory_space<vmem>>, vector<8x1xf32>
      %52 = arith.subf %50, %51 : vector<8x1xf32>
      %c0_31 = arith.constant 0 : index
      %c0_32 = arith.constant 0 : index
      %53 = vector.load %arg4[%c0_31, %c0_32] : memref<8x1xf32, #tpu.memory_space<vmem>>, vector<8x1xf32>
      tpu.vector_store %arg4[%c0_31, %c0_32], %52 {strides = array<i32>} : memref<8x1xf32, #tpu.memory_space<vmem>>, vector<8x1xf32>,
    } else {
    }
    return
  }
  func.func @transform_0(%arg0: i32, %arg1: i32) -> (i32, i32) {
    %c0_i32 = arith.constant 0 : i32
    %c0_i32_0 = arith.constant 0 : i32
    return %arg0, %c0_i32 : i32, i32
  }
  func.func @transform_1(%arg0: i32, %arg1: i32) -> (i32, i32) {
    %c0_i32 = arith.constant 0 : i32
    %c0_i32_0 = arith.constant 0 : i32
    return %c0_i32, %arg1 : i32, i32
  }
  func.func @transform_2(%arg0: i32, %arg1: i32) -> (i32, i32) {
    %c0_i32 = arith.constant 0 : i32
    %c0_i32_0 = arith.constant 0 : i32
    return %arg0, %c0_i32 : i32, i32
  }
}

</mosaic_0001>

<bundles_post_ra>
// kernel: asymm_inbatch_negative_infonce_loss.1
= control target key start
LH: loop header
LB: loop body
LE: loop exit
PB: predicated region body
PF: predicated region fallthrough
CT: control target
= control target key end

     0   :  { %vm25_vm0 = vcmask 261120   ;;  %vm115_vm1 = vcmask 64512   ;;  %v255_v1 = vmov 0.0|0.0   ;;  %vm20_vm2 = vcmask 7168   ;;  %s310_s0 = inlined_call_operand.vmem [shape: f32[8,32], index: 0, kind: input, shape index: {}]   ;;  %s311_s1 = inlined_call_operand.vmem [shape: f32[32,8], index: 1, kind: input, shape index: {}]   ;;  %s312_s2 = inlined_call_operand.vmem [shape: f32[8,1], index: 2, kind: output, shape index: {}]  }
   0x1   :  { %v11_v0 = vld [vmem:[%s310_s0] sm:$0xff]  ;;  %230 = vmatprep.subr.bf16.mxu0 %v255_v1  ;;  %v13_v3 = vld [vmem:[%s311_s1 + $0x8] sm:$0xff]  ;;  %v14_v8 = vld [vmem:[%s311_s1 + $0x10] sm:$0xff]  ;;  %v256_v10 = vmov 0.0   ;;  %vm257_vm3 = vmmov 0   ;;  %v258_v22 = vmov 0   ;;  %v182_v47 = vlaneseq }
   0x2   :  { %v12_v2 = vld [vmem:[%s311_s1] sm:$0xff]  ;;  %v24_v4 = vmul.f32 %v11_v0, %v11_v0  ;;  %v112_v7 = vmul.f32 %v13_v3, %v13_v3  ;;  %v15_v9 = vld [vmem:[%s311_s1 + $0x18] sm:$0xff]  ;;  %22 = vst.msk [vmem:[#allocation3] sm:$0xff] %vm20_vm2, %v256_v10  ;;  %23 = vst.msk [vmem:[#allocation4] sm:$0xff] %vm20_vm2, %v256_v10  ;;  %227 = vmatprep.mubr.msk.f32.mxu0 %vm257_vm3, %v256_v10  ;;  %v113_v11 = vmul.f32 %v14_v8, %v14_v8  ;;  %v259_v30 = vmov -inf  }
   0x3   :  { %v231_v5 = vpack.c.bf16 %v13_v3, %v12_v2  ;;  %v111_v6 = vmul.f32 %v12_v2, %v12_v2  ;;  %v114_v12 = vmul.f32 %v15_v9, %v15_v9  ;;  %v234_v16 = vpack.c.bf16 %v15_v9, %v14_v8  ;;  %241 = vset.pattern.permute.xlu0 %v258_v22 }
   0x4   :  { %v26_v13 = vsel %vm25_vm0, %v24_v4, 0.0  ;;  %v117_v15 = vsel %vm115_vm1, %v112_v7, 0.0  ;;  %v119_v18 = vsel %vm115_vm1, %v113_v11, 0.0  ;;  %242 = vset.pattern.permute.xlu1 %v258_v22  ;;  %21 = vst.msk [vmem:[#allocation2] sm:$0xff] %vm20_vm2, %v259_v30  ;;  %v183_v48 = vshrl.u32 %v182_v47, 7 }
   0x5   :  { %232 = vmatpush3.bf16.msra.mxu0 %v231_v5  ;;  %v116_v14 = vsel %vm115_vm1, %v111_v6, 0.0  ;;  %27 = vadd.xlane.f32.xlu0 %v26_v13  ;;  %v121_v19 = vsel %vm115_vm1, %v114_v12, 0.0  ;;  %v187_v49 = vand.u32 127, %v182_v47 }
   0x6   :  { %v118_v17 = vadd.f32 %v117_v15, %v116_v14  ;;  %233 = vmatprep.subr.bf16.mxu0 %v255_v1 }
   0x7   :  { %vm191_vm8 = vcmp.eq.s32.totalorder %v183_v48, %v187_v49 }
   0x8   :  { %v120_v20 = vadd.f32 %v119_v18, %v118_v17 }
   0x9   :  { %235 = vmatpush3.bf16.msra.mxu0 %v234_v16  ;;  %v190_v56 = vld [vmem:[#allocation4] sm:$0xff]  ;;  %v163_v5 = vld [vmem:[#allocation3] sm:$0xff] }
   0xa   :  { %v122_v21 = vadd.f32 %v121_v19, %v120_v20 }
   0xb   :  { %v147_v55 = vld [vmem:[#allocation2] sm:$0xff] }
   0xc   :  { %228 = vmatmul.mubr.msk.f32.vlgmr.msra.gmra.mrb[0].mxu0 %vm25_vm0, %v11_v0  ;;  %v123_v33 = vrot.slane %v122_v21, 4 }
   0xe   :  { %v124_v34 = vadd.f32 %v123_v33, %v122_v21 }
  0x10   :  { %v125_v35 = vrot.slane %v124_v34, 2 }
  0x12   :  { %v126_v36 = vadd.f32 %v125_v35, %v124_v34 }
  0x14   :  { %v127_v37 = vrot.slane %v126_v36, 1 }
  0x16   :  { %v128_v38 = vadd.f32 %v127_v37, %v126_v36 }
  0x18   :  { %vm131_vm6 = vcmp.eq.f32.partialorder %v128_v38, inf  ;;  %v134_v41 = vand.u32 2147483648, %v128_v38  ;;  %vm133_vm7 = vcmp.eq.f32.partialorder %v128_v38, 0.0 }
  0x92   :  { %v28_v23 = vpop.xlane.xlu0 %27 }
  0x93   :  { %243 = vrsqrt.f32 %v28_v23  ;;  %vm31_vm4 = vcmp.eq.f32.partialorder %v28_v23, inf  ;;  %v34_v26 = vand.u32 2147483648, %v28_v23  ;;  %vm33_vm5 = vcmp.eq.f32.partialorder %v28_v23, 0.0 }
  0x94   :  { %245 = vrsqrt.f32 %v128_v38 }
  0x9d   :  { %v244_v24 = vpop.eup %243 }
  0x9e   :  { %v30_v25 = vmul.f32 %v244_v24, %v28_v23  ;;  %v246_v39 = vpop.eup %245 }
  0x9f   :  { %v130_v40 = vmul.f32 %v246_v39, %v128_v38 }
  0xa0   :  { %v32_v27 = vsel %vm31_vm4, %v28_v23, %v30_v25 }
  0xa1   :  { %v35_v28 = vsel %vm33_vm5, %v34_v26, %v32_v27  ;;  %v132_v42 = vsel %vm131_vm6, %v128_v38, %v130_v40 }
  0xa2   :  { %36 = vst.msk [vmem:[#allocation5] sm:$0xff] %vm20_vm2, %v35_v28  ;;  %v135_v43 = vsel %vm133_vm7, %v134_v41, %v132_v42 }
  0xa9   :  { %v136_v29 = vld [vmem:[#allocation5] sm:$0xff] }
  0xaa   :  { %139 = vperm.xlu0 %241, %v136_v29  }
  0xdf   :  { %v107_v31 = vpop.f32.mrb[0].mxu0 }
  0xe0   :  { %v229_v32 = vpop.f32.mrb[1].mxu0 }
 0x129   :  { %v140_v44 = vpop.permute.xlu0 %139 }
 0x12a   :  { %v142_v45 = vmul.f32 %v140_v44, %v135_v43 }
 0x12c   :  { %v143_v46 = vmax.f32 %v142_v45, 1e-08 }
 0x12e   :  { %247 = vrcp.f32 %v143_v46 }
 0x138   :  { %v248_v50 = vpop.eup %247 }
 0x139   :  { %v146_v51 = vmul.f32 %v248_v50, %v107_v31 }
 0x13b   :  { %v148_v52 = vsel %vm115_vm1, %v146_v51, -inf  ;;  %v192_v53 = vsel %vm191_vm8, %v146_v51, 0.0 }
 0x13c   :  { %149 = vmax.xlane.f32.xlu1 %v148_v52  ;;  %v193_v54 = vsel %vm115_vm1, %v192_v53, 0.0 }
 0x13d   :  { %194 = vadd.xlane.f32.xlu0 %v193_v54 }
 0x1c9   :  { %v150_v57 = vpop.xlane.xlu1 %149 }
 0x1ca   :  { %v151_v58 = vmax.f32 %v147_v55, %v150_v57  ;;  %v195_v59 = vpop.xlane.xlu0 %194 }
 0x1cb   :  { %v196_v60 = vadd.f32 %v195_v59, %v190_v56 }
 0x1cc   :  { %v152_v61 = vsub.f32 %v147_v55, %v151_v58  ;;  %171 = vst.msk [vmem:[#allocation2] sm:$0xff] %vm20_vm2, %v151_v58  ;;  %157 = vperm.xlu1 %242, %v151_v58  }
 0x1cd   :  { %197 = vst.msk [vmem:[#allocation4] sm:$0xff] %vm20_vm2, %v196_v60 }
 0x1ce   :  { %v153_v3 = vmul.f32 1.442695, %v152_v61 }
 0x1d3   :  { %v201_v12 = vld [vmem:[#allocation2] sm:$0xff] }
 0x1d4   :  { %v206_v14 = vld [vmem:[#allocation4] sm:$0xff] }
 0x24b   :  { %v158_v62 = vpop.permute.xlu1 %157 }
 0x24c   :  { %v160_v63 = vsub.f32 %v146_v51, %v158_v62 }
 0x24e   :  { %v161_v0 = vmul.f32 1.442695, %v160_v63 }
 0x250   :  { %249 = vpow2.f32 %v161_v0 }
 0x251   :  { %251 = vpow2.f32 %v153_v3 }
 0x25a   :  { %v250_v1 = vpop.eup %249 }
 0x25b   :  { %v165_v2 = vsel %vm115_vm1, %v250_v1, 0.0  ;;  %v252_v4 = vpop.eup %251 }
 0x25c   :  { %166 = vadd.xlane.f32.xlu1 %v165_v2  ;;  %v164_v6 = vmul.f32 %v252_v4, %v163_v5 }
 0x2e9   :  { %v167_v7 = vpop.xlane.xlu1 %166 }
 0x2ea   :  { %v168_v8 = vadd.f32 %v167_v7, %v164_v6 }
 0x2ec   :  { %170 = vst.msk [vmem:[#allocation3] sm:$0xff] %vm20_vm2, %v168_v8 }
 0x2f3   :  { %v202_v9 = vld [vmem:[#allocation3] sm:$0xff] }
 0x2f4   :  { %253 = vlog2.f32 %v202_v9 }
 0x2fe   :  { %v254_v10 = vpop.eup %253 }
 0x2ff   :  { %v204_v11 = vmul.f32 0.6931472, %v254_v10 }
 0x301   :  { %v205_v13 = vadd.f32 %v204_v11, %v201_v12 }
 0x303   :  { %v207_v15 = vsub.f32 %v205_v13, %v206_v14 }
 0x305   :  { %208 = vst.msk [vmem:[%s312_s2] sm:$0xff] %vm20_vm2, %v207_v15 }

</bundles_post_ra>
